<compile_context>
chip_gen: v5e
topology: v5e:2x2
jax: 0.10.0
libtpu: 0.0.40
codegen_flags: <defaults>
</compile_context>

<pallas_src>
import functools

import jax
import jax.numpy as jnp
from jax.experimental import pallas as pl
from jax.experimental.pallas import tpu as pltpu


def _rgc_kernel(x_ref, w_ref, b_ref, gamma_ref, beta_ref, alpha_ref, o_ref, *,
                dilation, pad, window):
    """One (batch, L-tile) block per grid step.

    x_ref     : (1, Lp, C)   whole padded sequence of this batch element (resident)
    w_ref     : (K*C, 2C)    fused im2col conv weight (main ++ gate), bf16
    b_ref     : (1, 2C)      fused conv bias
    gamma_ref : (1, C)       LayerNorm scale
    beta_ref  : (1, C)       LayerNorm shift
    alpha_ref : (1,) SMEM    residual scale (scalar)
    o_ref     : (1, TL, C)   output tile
    """
    TL = o_ref.shape[1]
    C = o_ref.shape[2]
    K = w_ref.shape[0] // C

    # Tile + halo window sliced out of the resident padded sequence.  i*TL is always
    # sublane(8)-aligned (wrapper enforces TL % 8 == 0, or a single whole-seq tile).
    start = pl.multiple_of(pl.program_id(1) * TL, 8)
    win = x_ref[0, pl.ds(start, window), :]            # (window, C), input dtype
    win_bf = win.astype(jnp.bfloat16)                  # one down-cast for the MXU

    # im2col: K dilated taps concatenated along lanes -> one MXU matmul with
    # contraction depth K*C (instead of K separate depth-C matmuls), f32 accumulation.
    cols = [win_bf[t * dilation: t * dilation + TL, :] for t in range(K)]
    xcol = cols[0] if K == 1 else jnp.concatenate(cols, axis=-1)      # (TL, K*C)
    acc = jnp.dot(xcol, w_ref[...], preferred_element_type=jnp.float32)  # (TL, 2C) f32
    acc = acc + b_ref[...].astype(jnp.float32)

    # Gated activation: main * sigmoid(gate); exp and the reciprocal both run on the EUP.
    main = acc[:, :C]
    gate = acc[:, C:]
    h = main * pl.reciprocal(1.0 + jnp.exp(-gate), approx=True)

    # LayerNorm over channels (biased variance, eps = 1e-5), all f32.
    # TODO(synk): if production C < 128, pack 128//C positions per vreg row in this
    # epilogue / the output store to avoid lane-sparse vregs and masked vst.
    mean = jnp.mean(h, axis=-1, keepdims=True)
    d = h - mean
    var = jnp.mean(d * d, axis=-1, keepdims=True)
    h = d * jax.lax.rsqrt(var + 1e-5)
    h = h * gamma_ref[...].astype(jnp.float32) + beta_ref[...].astype(jnp.float32)

    # Residual rows come from the same (full-precision) window, scaled by alpha.
    resid = win[pad: pad + TL, :].astype(jnp.float32)
    o_ref[0] = (resid + alpha_ref[0] * h).astype(o_ref.dtype)


def _pick_seq_tile(L, C, kernel_size):
    """Largest multiple-of-8 divisor of L whose per-tile intermediates stay ~<= 8 MiB."""
    per_row_bytes = max(1, C) * (2 * kernel_size + 24)   # bf16 im2col + f32 epilogue, rough
    target = max(64, min(2048, (8 << 20) // per_row_bytes))
    best = None
    for tl in range(8, min(target, L) + 1, 8):
        if L % tl == 0:
            best = tl
    # TODO(synk): for awkward L (no multiple-of-8 divisor <= target), pad L up to a tile
    # multiple and mask the tail instead of falling back to a single whole-sequence tile.
    return best if best is not None else L


def residual_gated_conv1d(x, conv_w, conv_b, gamma, beta, alpha,
                          kernel_size, dilation_rate, seq_tile=None):
    """x: (B, L, C) channels-last.  conv_w: (2C, C, K) (PyTorch Conv1d OIK layout)."""
    B, L, C = x.shape
    K = kernel_size
    assert conv_w.shape == (2 * C, C, K)
    # The PyTorch module is only shape-preserving when dilation*(kernel_size-1) is even.
    assert (dilation_rate * (K - 1)) % 2 == 0, \
        "dilation_rate*(kernel_size-1) must be even for shape-preserving padding"
    pad = dilation_rate * (K - 1) // 2

    TL = seq_tile if seq_tile is not None else _pick_seq_tile(L, C, K)
    assert L % TL == 0 and (TL % 8 == 0 or L // TL == 1), \
        "seq tile must divide L and be a multiple of 8 (or cover the whole sequence)"
    nL = L // TL
    W = TL + 2 * pad                    # window (tile + halo) each step actually uses
    W_al = -(-W // 8) * 8               # rounded up so window loads stay sublane-aligned
    Lp = (nL - 1) * TL + W_al           # padded length so every window is in bounds

    # Pad once (left halo = conv padding, right = conv padding + alignment slack).
    # The kernel reads x_pad directly — no materialized per-tile window copies.
    x_pad = jnp.pad(x, ((0, 0), (pad, Lp - L - pad), (0, 0)))

    # Fused im2col weight: (2C, C, K) -> (K, C, 2C) -> (K*C, 2C), bf16 (MXU-native).
    w_fused = jnp.transpose(conv_w, (2, 1, 0)).reshape(K * C, 2 * C).astype(jnp.bfloat16)
    b_fused = conv_b.reshape(1, 2 * C).astype(jnp.float32)
    gamma2 = gamma.reshape(1, C).astype(jnp.float32)
    beta2 = beta.reshape(1, C).astype(jnp.float32)
    alpha1 = alpha.reshape(1).astype(jnp.float32)

    # Generation-aware VMEM budget (v5e/v6e: 128 MiB physical, v7x: 64 MiB).
    try:
        vmem_cap = int(pltpu.get_tpu_info().vmem_capacity_bytes)
    except Exception:
        vmem_cap = 64 << 20
    budget = max(32 << 20, min(96 << 20, vmem_cap - (24 << 20)))

    itemsize = x.dtype.itemsize
    weight_bytes = K * C * 2 * C * 2
    needed = (2 * Lp * C * itemsize                    # resident padded-seq block (2 bufs)
              + weight_bytes                           # fused weight (single-buffered)
              + 2 * TL * C * itemsize                  # output tile (double-buffered)
              + W_al * C * 6 + TL * C * (2 * K + 28)   # in-kernel intermediates, rough
              + (2 << 20))                             # slack
    vmem_limit = int(max(32 << 20, min(budget, needed)))

    flops = 4 * B * L * K * C * C                      # 2 * (TL x K*C x 2C) matmul
    transcendentals = B * L * (2 * C + 1)              # exp + reciprocal + rsqrt
    bytes_accessed = (B * Lp * C + B * L * C) * itemsize + weight_bytes

    kernel = functools.partial(_rgc_kernel, dilation=dilation_rate, pad=pad, window=W_al)

    def make_call(single_buffer_params):
        def const_spec(shape):
            nd = len(shape)

            def imap(b, i):
                return (0,) * nd

            if single_buffer_params:
                return pl.BlockSpec(shape, imap, pipeline_mode=pl.Buffered(1))
            return pl.BlockSpec(shape, imap)

        return pl.pallas_call(
            kernel,
            out_shape=jax.ShapeDtypeStruct((B, L, C), x.dtype),
            grid=(B, nL),
            in_specs=[
                # Whole padded sequence of the current batch element; the index map is
                # constant along the L-tile axis so it is DMA'd once per batch element.
                pl.BlockSpec((1, Lp, C), lambda b, i: (b, 0, 0)),
                const_spec((K * C, 2 * C)),            # fused im2col weight (resident)
                const_spec((1, 2 * C)),                # fused bias
                const_spec((1, C)),                    # gamma
                const_spec((1, C)),                    # beta
                pl.BlockSpec(memory_space=pltpu.MemorySpace.SMEM),   # alpha scalar
            ],
            out_specs=pl.BlockSpec((1, TL, C), lambda b, i: (b, i, 0)),
            compiler_params=pltpu.CompilerParams(
                dimension_semantics=("parallel", "arbitrary"),
                vmem_limit_bytes=vmem_limit),
            cost_estimate=pl.CostEstimate(flops=flops,
                                          transcendentals=transcendentals,
                                          bytes_accessed=bytes_accessed),
        )

    args = (x_pad, w_fused, b_fused, gamma2, beta2, alpha1)
    try:
        # Grid-invariant params single-buffered (frees VMEM, most valuable on v7x).
        return make_call(True)(*args)
    except Exception:
        # Fallback for jax builds without pipeline_mode / Buffered(1) support.
        return make_call(False)(*args)


def reference(x, conv_w, conv_b, gamma, beta, alpha, kernel_size, dilation_rate):
    """Pure-JAX f32 reference mirroring the PyTorch forward exactly."""
    C = x.shape[-1]
    pad = dilation_rate * (kernel_size - 1) // 2
    xc = jnp.transpose(x, (0, 2, 1))                      # NCL (like input.permute)
    y = jax.lax.conv_general_dilated(
        xc, conv_w, window_strides=(1,), padding=[(pad, pad)],
        rhs_dilation=(dilation_rate,),
        dimension_numbers=("NCH", "OIH", "NCH"))
    y = y + conv_b[None, :, None]
    y = jnp.transpose(y, (0, 2, 1))                       # back to (B, L, 2C)
    gate = jax.nn.sigmoid(y[..., C:])
    h = y[..., :C] * gate
    mean = jnp.mean(h, axis=-1, keepdims=True)
    var = jnp.mean((h - mean) ** 2, axis=-1, keepdims=True)
    h = (h - mean) / jnp.sqrt(var + 1e-5)
    h = h * gamma + beta
    return x + alpha * h


if __name__ == "__main__":
    B, L, filters = 2, 64, 32
    kernel_size, dilation_rate = 3, 2

    key = jax.random.PRNGKey(0)
    k1, k2, k3, k4, k5, k6 = jax.random.split(key, 6)
    x = jax.random.normal(k1, (B, L, filters), jnp.float32)
    # Parameter shapes from __init__: Conv1d(filters, 2*filters, K), LayerNorm(filters), alpha (1,)
    conv_w = jax.random.normal(k2, (2 * filters, filters, kernel_size), jnp.float32) * 0.1
    conv_b = jax.random.normal(k3, (2 * filters,), jnp.float32) * 0.1
    gamma = 1.0 + 0.1 * jax.random.normal(k4, (filters,), jnp.float32)
    beta = 0.1 * jax.random.normal(k5, (filters,), jnp.float32)
    alpha = 0.5 + 0.25 * jax.random.normal(k6, (1,), jnp.float32)   # nonzero -> residual exercised

    ref = reference(x, conv_w, conv_b, gamma, beta, alpha, kernel_size, dilation_rate)

    # seq_tile=32 exercises the halo-window tiling (two L-tiles per batch element);
    # seq_tile=None exercises the default tile chosen by _pick_seq_tile.
    for tile in (32, None):
        out = residual_gated_conv1d(x, conv_w, conv_b, gamma, beta, alpha,
                                    kernel_size, dilation_rate, seq_tile=tile)
        out = jax.block_until_ready(out)
        assert out.shape == (B, L, filters)
        # bf16 MXU inputs (f32 accumulation) + approx reciprocal vs a pure-f32 reference.
        max_err = float(jnp.max(jnp.abs(out - ref)))
        assert jnp.allclose(out, ref, atol=2e-2, rtol=2e-2), (tile, max_err)
    print("KERNEL_OK")
</pallas_src>

<mosaic_0001>
module attributes {stable_mosaic.version = 11 : i64} {
  func.func @_rgc_kernel(%arg0: i32, %arg1: i32, %arg2: memref<1x72x32xf32, #tpu.memory_space<vmem>>, %arg3: memref<96x64xbf16, #tpu.memory_space<vmem>>, %arg4: memref<1x64xf32, #tpu.memory_space<vmem>>, %arg5: memref<1x32xf32, #tpu.memory_space<vmem>>, %arg6: memref<1x32xf32, #tpu.memory_space<vmem>>, %arg7: memref<1xf32, #tpu.memory_space<smem>>, %arg8: memref<1x32x32xf32, #tpu.memory_space<vmem>>) attributes {dimension_semantics = [#tpu.dimension_semantics<parallel>, #tpu.dimension_semantics<arbitrary>], iteration_bounds = array<i64: 2, 2>, scalar_prefetch = 0 : i64, scratch_operands = 0 : i64, tpu.core_type = #tpu.core_type<tc>, window_params = [{transform_indices = @transform_0, window_bounds = array<i64: 1, 72, 32>}, {pipeline_mode = #tpu.pipeline_mode<synchronous>, transform_indices = @transform_1, window_bounds = array<i64: 96, 64>}, {pipeline_mode = #tpu.pipeline_mode<synchronous>, transform_indices = @transform_2, window_bounds = array<i64: 1, 64>}, {pipeline_mode = #tpu.pipeline_mode<synchronous>, transform_indices = @transform_3, window_bounds = array<i64: 1, 32>}, {pipeline_mode = #tpu.pipeline_mode<synchronous>, transform_indices = @transform_4, window_bounds = array<i64: 1, 32>}, {transform_indices = @transform_5, window_bounds = array<i64: 1>}, {transform_indices = @transform_6, window_bounds = array<i64: 1, 32, 32>}]} {
    %c32_i32 = arith.constant 32 : i32
    %0 = arith.muli %arg1, %c32_i32 : i32
    %1 = tpu.assume_multiple %0, 8 : i32
    %c0 = arith.constant 0 : index
    %2 = arith.index_cast %1 : i32 to index
    %c0_0 = arith.constant 0 : index
    %3 = vector.load %arg2[%c0, %2, %c0_0] : memref<1x72x32xf32, #tpu.memory_space<vmem>>, vector<1x40x32xf32>
    %4 = vector.shape_cast %3 : vector<1x40x32xf32> to vector<40x32xf32>
    %5 = arith.truncf %4 : vector<40x32xf32> to vector<40x32xbf16>
    %6 = vector.extract_strided_slice %5 {offsets = [0, 0], sizes = [32, 32], strides = [1, 1]} : vector<40x32xbf16> to vector<32x32xbf16>
    %7 = vector.extract_strided_slice %5 {offsets = [2, 0], sizes = [32, 32], strides = [1, 1]} : vector<40x32xbf16> to vector<32x32xbf16>
    %8 = vector.extract_strided_slice %5 {offsets = [4, 0], sizes = [32, 32], strides = [1, 1]} : vector<40x32xbf16> to vector<32x32xbf16>
    %9 = tpu.concatenate %6, %7, %8 in 1 : vector<32x32xbf16>, vector<32x32xbf16>, vector<32x32xbf16> -> vector<32x96xbf16>
    %c0_1 = arith.constant 0 : index
    %c0_2 = arith.constant 0 : index
    %10 = vector.load %arg3[%c0_1, %c0_2] : memref<96x64xbf16, #tpu.memory_space<vmem>>, vector<96x64xbf16>
    %cst = arith.constant dense<0.000000e+00> : vector<32x64xf32>
    %11 = tpu.matmul %9, %10, %cst {dimension_numbers = #tpu.dot_dimension_numbers<[1], [0], [0], [1], [0, 0, 1, 1], [], []>} : vector<32x96xbf16>, vector<96x64xbf16>, vector<32x64xf32> -> vector<32x64xf32>
    %c0_3 = arith.constant 0 : index
    %c0_4 = arith.constant 0 : index
    %12 = vector.load %arg4[%c0_3, %c0_4] : memref<1x64xf32, #tpu.memory_space<vmem>>, vector<1x64xf32>
    %13 = vector.broadcast %12 : vector<1x64xf32> to vector<32x64xf32>
    %14 = arith.addf %11, %13 : vector<32x64xf32>
    %15 = vector.extract_strided_slice %14 {offsets = [0, 0], sizes = [32, 32], strides = [1, 1]} : vector<32x64xf32> to vector<32x32xf32>
    %16 = vector.extract_strided_slice %14 {offsets = [0, 32], sizes = [32, 32], strides = [1, 1]} : vector<32x64xf32> to vector<32x32xf32>
    %cst_5 = arith.constant 0.000000e+00 : f32
    %17 = vector.broadcast %cst_5 : f32 to vector<32x32xf32>
    %18 = arith.subf %17, %16 : vector<32x32xf32>
    %19 = math.exp %18 : vector<32x32xf32>
    %cst_6 = arith.constant 1.000000e+00 : f32
    %20 = vector.broadcast %cst_6 : f32 to vector<32x32xf32>
    %21 = arith.addf %20, %19 : vector<32x32xf32>
    %22 = tpu.reciprocal %21 {approx = true} : vector<32x32xf32> -> vector<32x32xf32>
    %23 = arith.mulf %15, %22 : vector<32x32xf32>
    %cst_7 = arith.constant dense<0.000000e+00> : vector<32xf32>
    %24 = vector.multi_reduction <add>, %23, %cst_7 [1] : vector<32x32xf32> to vector<32xf32>
    %25 = vector.shape_cast %24 : vector<32xf32> to vector<32x1xf32>
    %cst_8 = arith.constant 3.200000e+01 : f32
    %26 = vector.broadcast %cst_8 : f32 to vector<32x1xf32>
    %27 = arith.divf %25, %26 : vector<32x1xf32>
    %28 = vector.broadcast %27 : vector<32x1xf32> to vector<32x32xf32>
    %29 = arith.subf %23, %28 : vector<32x32xf32>
    %30 = arith.mulf %29, %29 : vector<32x32xf32>
    %cst_9 = arith.constant dense<0.000000e+00> : vector<32xf32>
    %31 = vector.multi_reduction <add>, %30, %cst_9 [1] : vector<32x32xf32> to vector<32xf32>
    %32 = vector.shape_cast %31 : vector<32xf32> to vector<32x1xf32>
    %cst_10 = arith.constant 3.200000e+01 : f32
    %33 = vector.broadcast %cst_10 : f32 to vector<32x1xf32>
    %34 = arith.divf %32, %33 : vector<32x1xf32>
    %cst_11 = arith.constant 9.99999974E-6 : f32
    %35 = vector.broadcast %cst_11 : f32 to vector<32x1xf32>
    %36 = arith.addf %34, %35 : vector<32x1xf32>
    %37 = math.rsqrt %36 : vector<32x1xf32>
    %38 = vector.broadcast %37 : vector<32x1xf32> to vector<32x32xf32>
    %39 = arith.mulf %29, %38 : vector<32x32xf32>
    %c0_12 = arith.constant 0 : index
    %c0_13 = arith.constant 0 : index
    %40 = vector.load %arg5[%c0_12, %c0_13] : memref<1x32xf32, #tpu.memory_space<vmem>>, vector<1x32xf32>
    %41 = vector.broadcast %40 : vector<1x32xf32> to vector<32x32xf32>
    %42 = arith.mulf %39, %41 : vector<32x32xf32>
    %c0_14 = arith.constant 0 : index
    %c0_15 = arith.constant 0 : index
    %43 = vector.load %arg6[%c0_14, %c0_15] : memref<1x32xf32, #tpu.memory_space<vmem>>, vector<1x32xf32>
    %44 = vector.broadcast %43 : vector<1x32xf32> to vector<32x32xf32>
    %45 = arith.addf %42, %44 : vector<32x32xf32>
    %46 = vector.extract_strided_slice %4 {offsets = [2, 0], sizes = [32, 32], strides = [1, 1]} : vector<40x32xf32> to vector<32x32xf32>
    %c0_16 = arith.constant 0 : index
    %47 = memref.load %arg7[%c0_16] : memref<1xf32, #tpu.memory_space<smem>>
    %48 = vector.broadcast %47 : f32 to vector<32x32xf32>
    %49 = arith.mulf %48, %45 : vector<32x32xf32>
    %50 = arith.addf %46, %49 : vector<32x32xf32>
    %c0_17 = arith.constant 0 : index
    %c0_18 = arith.constant 0 : index
    %c0_19 = arith.constant 0 : index
    %51 = vector.load %arg8[%c0_17, %c0_18, %c0_19] : memref<1x32x32xf32, #tpu.memory_space<vmem>>, vector<1x32x32xf32>
    %52 = vector.shape_cast %51 : vector<1x32x32xf32> to vector<32x32xf32>
    %53 = vector.shape_cast %50 : vector<32x32xf32> to vector<1x32x32xf32>
    tpu.vector_store %arg8[%c0_17, %c0_18, %c0_19], %53 {strides = array<i32>} : memref<1x32x32xf32, #tpu.memory_space<vmem>>, vector<1x32x32xf32>,
    return
  }
  func.func @transform_0(%arg0: i32, %arg1: i32) -> (i32, i32, i32) {
    %c0_i32 = arith.constant 0 : i32
    %c0_i32_0 = arith.constant 0 : i32
    %c0_i32_1 = arith.constant 0 : i32
    return %arg0, %c0_i32, %c0_i32_0 : i32, i32, i32
  }
  func.func @transform_1(%arg0: i32, %arg1: i32) -> (i32, i32) {
    %c0_i32 = arith.constant 0 : i32
    %c0_i32_0 = arith.constant 0 : i32
    %c0_i32_1 = arith.constant 0 : i32
    return %c0_i32, %c0_i32_0 : i32, i32
  }
  func.func @transform_2(%arg0: i32, %arg1: i32) -> (i32, i32) {
    %c0_i32 = arith.constant 0 : i32
    %c0_i32_0 = arith.constant 0 : i32
    %c0_i32_1 = arith.constant 0 : i32
    return %c0_i32, %c0_i32_0 : i32, i32
  }
  func.func @transform_3(%arg0: i32, %arg1: i32) -> (i32, i32) {
    %c0_i32 = arith.constant 0 : i32
    %c0_i32_0 = arith.constant 0 : i32
    %c0_i32_1 = arith.constant 0 : i32
    return %c0_i32, %c0_i32_0 : i32, i32
  }
  func.func @transform_4(%arg0: i32, %arg1: i32) -> (i32, i32) {
    %c0_i32 = arith.constant 0 : i32
    %c0_i32_0 = arith.constant 0 : i32
    %c0_i32_1 = arith.constant 0 : i32
    return %c0_i32, %c0_i32_0 : i32, i32
  }
  func.func @transform_5(%arg0: i32, %arg1: i32) -> i32 {
    %c0_i32 = arith.constant 0 : i32
    %c0_i32_0 = arith.constant 0 : i32
    return %c0_i32 : i32
  }
  func.func @transform_6(%arg0: i32, %arg1: i32) -> (i32, i32, i32) {
    %c0_i32 = arith.constant 0 : i32
    %c0_i32_0 = arith.constant 0 : i32
    return %arg0, %arg1, %c0_i32 : i32, i32, i32
  }
}

module attributes {stable_mosaic.version = 11 : i64} {
  func.func @_rgc_kernel(%arg0: i32, %arg1: i32, %arg2: memref<1x72x32xf32, #tpu.memory_space<vmem>>, %arg3: memref<96x64xbf16, #tpu.memory_space<vmem>>, %arg4: memref<1x64xf32, #tpu.memory_space<vmem>>, %arg5: memref<1x32xf32, #tpu.memory_space<vmem>>, %arg6: memref<1x32xf32, #tpu.memory_space<vmem>>, %arg7: memref<1xf32, #tpu.memory_space<smem>>, %arg8: memref<1x32x32xf32, #tpu.memory_space<vmem>>) attributes {dimension_semantics = [#tpu.dimension_semantics<parallel>, #tpu.dimension_semantics<arbitrary>], iteration_bounds = array<i64: 2, 2>, scalar_prefetch = 0 : i64, scratch_operands = 0 : i64, tpu.core_type = #tpu.core_type<tc>, window_params = [{transform_indices = @transform_0, window_bounds = array<i64: 1, 72, 32>}, {pipeline_mode = #tpu.pipeline_mode<synchronous>, transform_indices = @transform_1, window_bounds = array<i64: 96, 64>}, {pipeline_mode = #tpu.pipeline_mode<synchronous>, transform_indices = @transform_2, window_bounds = array<i64: 1, 64>}, {pipeline_mode = #tpu.pipeline_mode<synchronous>, transform_indices = @transform_3, window_bounds = array<i64: 1, 32>}, {pipeline_mode = #tpu.pipeline_mode<synchronous>, transform_indices = @transform_4, window_bounds = array<i64: 1, 32>}, {transform_indices = @transform_5, window_bounds = array<i64: 1>}, {transform_indices = @transform_6, window_bounds = array<i64: 1, 32, 32>}]} {
    %c32_i32 = arith.constant 32 : i32
    %0 = arith.muli %arg1, %c32_i32 : i32
    %1 = tpu.assume_multiple %0, 8 : i32
    %c0 = arith.constant 0 : index
    %2 = arith.index_cast %1 : i32 to index
    %c0_0 = arith.constant 0 : index
    %3 = vector.load %arg2[%c0, %2, %c0_0] : memref<1x72x32xf32, #tpu.memory_space<vmem>>, vector<1x40x32xf32>
    %4 = vector.shape_cast %3 : vector<1x40x32xf32> to vector<40x32xf32>
    %5 = arith.truncf %4 : vector<40x32xf32> to vector<40x32xbf16>
    %6 = vector.extract_strided_slice %5 {offsets = [0, 0], sizes = [32, 32], strides = [1, 1]} : vector<40x32xbf16> to vector<32x32xbf16>
    %7 = vector.extract_strided_slice %5 {offsets = [2, 0], sizes = [32, 32], strides = [1, 1]} : vector<40x32xbf16> to vector<32x32xbf16>
    %8 = vector.extract_strided_slice %5 {offsets = [4, 0], sizes = [32, 32], strides = [1, 1]} : vector<40x32xbf16> to vector<32x32xbf16>
    %9 = tpu.concatenate %6, %7, %8 in 1 : vector<32x32xbf16>, vector<32x32xbf16>, vector<32x32xbf16> -> vector<32x96xbf16>
    %c0_1 = arith.constant 0 : index
    %c0_2 = arith.constant 0 : index
    %10 = vector.load %arg3[%c0_1, %c0_2] : memref<96x64xbf16, #tpu.memory_space<vmem>>, vector<96x64xbf16>
    %cst = arith.constant dense<0.000000e+00> : vector<32x64xf32>
    %11 = tpu.matmul %9, %10, %cst {dimension_numbers = #tpu.dot_dimension_numbers<[1], [0], [0], [1], [0, 0, 1, 1], [], []>} : vector<32x96xbf16>, vector<96x64xbf16>, vector<32x64xf32> -> vector<32x64xf32>
    %c0_3 = arith.constant 0 : index
    %c0_4 = arith.constant 0 : index
    %12 = vector.load %arg4[%c0_3, %c0_4] : memref<1x64xf32, #tpu.memory_space<vmem>>, vector<1x64xf32>
    %13 = vector.broadcast %12 : vector<1x64xf32> to vector<32x64xf32>
    %14 = arith.addf %11, %13 : vector<32x64xf32>
    %15 = vector.extract_strided_slice %14 {offsets = [0, 0], sizes = [32, 32], strides = [1, 1]} : vector<32x64xf32> to vector<32x32xf32>
    %16 = vector.extract_strided_slice %14 {offsets = [0, 32], sizes = [32, 32], strides = [1, 1]} : vector<32x64xf32> to vector<32x32xf32>
    %cst_5 = arith.constant 0.000000e+00 : f32
    %17 = vector.broadcast %cst_5 : f32 to vector<32x32xf32>
    %18 = arith.subf %17, %16 : vector<32x32xf32>
    %19 = math.exp %18 : vector<32x32xf32>
    %cst_6 = arith.constant 1.000000e+00 : f32
    %20 = vector.broadcast %cst_6 : f32 to vector<32x32xf32>
    %21 = arith.addf %20, %19 : vector<32x32xf32>
    %22 = tpu.reciprocal %21 {approx = true} : vector<32x32xf32> -> vector<32x32xf32>
    %23 = arith.mulf %15, %22 : vector<32x32xf32>
    %cst_7 = arith.constant dense<0.000000e+00> : vector<32xf32>
    %24 = vector.multi_reduction <add>, %23, %cst_7 [1] : vector<32x32xf32> to vector<32xf32>
    %25 = vector.shape_cast %24 : vector<32xf32> to vector<32x1xf32>
    %cst_8 = arith.constant 3.200000e+01 : f32
    %26 = vector.broadcast %cst_8 : f32 to vector<32x1xf32>
    %27 = arith.divf %25, %26 : vector<32x1xf32>
    %28 = vector.broadcast %27 : vector<32x1xf32> to vector<32x32xf32>
    %29 = arith.subf %23, %28 : vector<32x32xf32>
    %30 = arith.mulf %29, %29 : vector<32x32xf32>
    %cst_9 = arith.constant dense<0.000000e+00> : vector<32xf32>
    %31 = vector.multi_reduction <add>, %30, %cst_9 [1] : vector<32x32xf32> to vector<32xf32>
    %32 = vector.shape_cast %31 : vector<32xf32> to vector<32x1xf32>
    %cst_10 = arith.constant 3.200000e+01 : f32
    %33 = vector.broadcast %cst_10 : f32 to vector<32x1xf32>
    %34 = arith.divf %32, %33 : vector<32x1xf32>
    %cst_11 = arith.constant 9.99999974E-6 : f32
    %35 = vector.broadcast %cst_11 : f32 to vector<32x1xf32>
    %36 = arith.addf %34, %35 : vector<32x1xf32>
    %37 = math.rsqrt %36 : vector<32x1xf32>
    %38 = vector.broadcast %37 : vector<32x1xf32> to vector<32x32xf32>
    %39 = arith.mulf %29, %38 : vector<32x32xf32>
    %c0_12 = arith.constant 0 : index
    %c0_13 = arith.constant 0 : index
    %40 = vector.load %arg5[%c0_12, %c0_13] : memref<1x32xf32, #tpu.memory_space<vmem>>, vector<1x32xf32>
    %41 = vector.broadcast %40 : vector<1x32xf32> to vector<32x32xf32>
    %42 = arith.mulf %39, %41 : vector<32x32xf32>
    %c0_14 = arith.constant 0 : index
    %c0_15 = arith.constant 0 : index
    %43 = vector.load %arg6[%c0_14, %c0_15] : memref<1x32xf32, #tpu.memory_space<vmem>>, vector<1x32xf32>
    %44 = vector.broadcast %43 : vector<1x32xf32> to vector<32x32xf32>
    %45 = arith.addf %42, %44 : vector<32x32xf32>
    %46 = vector.extract_strided_slice %4 {offsets = [2, 0], sizes = [32, 32], strides = [1, 1]} : vector<40x32xf32> to vector<32x32xf32>
    %c0_16 = arith.constant 0 : index
    %47 = memref.load %arg7[%c0_16] : memref<1xf32, #tpu.memory_space<smem>>
    %48 = vector.broadcast %47 : f32 to vector<32x32xf32>
    %49 = arith.mulf %48, %45 : vector<32x32xf32>
    %50 = arith.addf %46, %49 : vector<32x32xf32>
    %c0_17 = arith.constant 0 : index
    %c0_18 = arith.constant 0 : index
    %c0_19 = arith.constant 0 : index
    %51 = vector.load %arg8[%c0_17, %c0_18, %c0_19] : memref<1x32x32xf32, #tpu.memory_space<vmem>>, vector<1x32x32xf32>
    %52 = vector.shape_cast %51 : vector<1x32x32xf32> to vector<32x32xf32>
    %53 = vector.shape_cast %50 : vector<32x32xf32> to vector<1x32x32xf32>
    tpu.vector_store %arg8[%c0_17, %c0_18, %c0_19], %53 {strides = array<i32>} : memref<1x32x32xf32, #tpu.memory_space<vmem>>, vector<1x32x32xf32>,
    return
  }
  func.func @transform_0(%arg0: i32, %arg1: i32) -> (i32, i32, i32) {
    %c0_i32 = arith.constant 0 : i32
    %c0_i32_0 = arith.constant 0 : i32
    %c0_i32_1 = arith.constant 0 : i32
    return %arg0, %c0_i32, %c0_i32_0 : i32, i32, i32
  }
  func.func @transform_1(%arg0: i32, %arg1: i32) -> (i32, i32) {
    %c0_i32 = arith.constant 0 : i32
    %c0_i32_0 = arith.constant 0 : i32
    %c0_i32_1 = arith.constant 0 : i32
    return %c0_i32, %c0_i32_0 : i32, i32
  }
  func.func @transform_2(%arg0: i32, %arg1: i32) -> (i32, i32) {
    %c0_i32 = arith.constant 0 : i32
    %c0_i32_0 = arith.constant 0 : i32
    %c0_i32_1 = arith.constant 0 : i32
    return %c0_i32, %c0_i32_0 : i32, i32
  }
  func.func @transform_3(%arg0: i32, %arg1: i32) -> (i32, i32) {
    %c0_i32 = arith.constant 0 : i32
    %c0_i32_0 = arith.constant 0 : i32
    %c0_i32_1 = arith.constant 0 : i32
    return %c0_i32, %c0_i32_0 : i32, i32
  }
  func.func @transform_4(%arg0: i32, %arg1: i32) -> (i32, i32) {
    %c0_i32 = arith.constant 0 : i32
    %c0_i32_0 = arith.constant 0 : i32
    %c0_i32_1 = arith.constant 0 : i32
    return %c0_i32, %c0_i32_0 : i32, i32
  }
  func.func @transform_5(%arg0: i32, %arg1: i32) -> i32 {
    %c0_i32 = arith.constant 0 : i32
    %c0_i32_0 = arith.constant 0 : i32
    return %c0_i32 : i32
  }
  func.func @transform_6(%arg0: i32, %arg1: i32) -> (i32, i32, i32) {
    %c0_i32 = arith.constant 0 : i32
    %c0_i32_0 = arith.constant 0 : i32
    return %arg0, %arg1, %c0_i32 : i32, i32, i32
  }
}

</mosaic_0001>

<bundles_post_ra>
// kernel: tpu_custom_call.1
= control target key start
LH: loop header
LB: loop body
LE: loop exit
PB: predicated region body
PF: predicated region fallthrough
CT: control target
= control target key end

     0   :  { %s888_s23 = smov 0   ;;  %s890_s24 = smov 0   ;;  %s1058_s0 = inlined_call_operand.vmem [shape: f32[2,72,32], index: 0, kind: input, shape index: {}]   ;;  %s1059_s1 = inlined_call_operand.vmem [shape: bf16[96,64], index: 1, kind: input, shape index: {}]   ;;  %s1060_s2 = inlined_call_operand.vmem [shape: f32[1,64], index: 2, kind: input, shape index: {}]   ;;  %s1061_s3 = inlined_call_operand.vmem [shape: f32[1,32], index: 3, kind: input, shape index: {}]   ;;  %s1062_s4 = inlined_call_operand.vmem [shape: f32[1,32], index: 4, kind: input, shape index: {}]   ;;  %s1063_s5 = inlined_call_operand.<no memory space> [shape: f32[1], index: 5, kind: input, shape index: {}]   ;;  %s1064_s6 = inlined_call_operand.vmem [shape: f32[2,64,32], index: 6, kind: output, shape index: {}]  }
   0x1   :  { %11 = sst [smem:[#allocation2]] %s1063_s5  ;;  %s892_s25 = smov 0  }
   0x2   :  { %s894_s26 = smov 0   ;;  %s896_s27 = smov 0  }
   0x3 LB: > { %s26_s5 = sadd.s32 1, %s836_s25  ;;  %s29_s28 = sadd.s32 1, %s840_s26  ;;  %s844_s27 = sphi %s896_s27, %s17_s27   ;;  %s840_s26 = sphi %s894_s26, %s1068_s26   ;;  %s836_s25 = sphi %s892_s25, %s1067_s25   ;;  %s832_s24 = sphi %s890_s24, %s1066_s24   ;;  %s828_s23 = sphi %s888_s23, %s1065_s23  }
   0x4   : > { %p27_p0 = scmp.ge.s32.totalorder %s26_s5, 2  ;;  %p686_p1 = scmp.ge.s32.totalorder %s844_s27, 1 }
   0x5   : > { %p227_p2 = scmp.lt.s32.totalorder %s844_s27, 5 }
   0x6   : > { %s1070_s5 = smov (%p27_p0, %s26_s5), 0  ;;  %s1072_s28 = smov (!%p27_p0, %s29_s28), %s840_s26 }
   0x7   : > { %p228_p3 = pnand %p686_p1, %p227_p2  ;;  %p31_p4 = scmp.ge.s32.totalorder %s1072_s28, 2 }
   0x8   : > { %p261_p5 = scmp.lt.s32.totalorder (!%p228_p3), %s832_s24, 1  ;;  %s691_s10 = sshll.u32 (!%p228_p3), %s828_s23, 5 }
   0x9   : > { %s1074_s28 = smov (%p31_p4, %s1072_s28), 0  ;;  %231 = sbr.rel (%p228_p3) target bundleno = 704 (0x2c0), region = 44 }
   0xa   : > { %s846_s29 = smov (!%p228_p3), 32   ;;  %s847_s30 = smov (!%p228_p3), 64  }
   0xb   : > { %s561_s11 = sld [smem:[#allocation2]] (!%p228_p3) }
   0xe   : > { %v725_v0 = vld [vmem:[%s1059_s1 + $0x28] sm:$0xff]  ;;  %s1076_s24 = smov (!%p261_p5, %s832_s24), 1  ;;  %v724_v1 = vld [vmem:[%s1059_s1 + $0x20] sm:$0xff]  ;;  %v723_v2 = vld [vmem:[%s1059_s1 + $0x18] sm:$0xff]  ;;  %vm302_vm0 = vcmask 1046528   ;;  %vm312_vm1 = vcmask 1045504  }
   0xf   : > { %393 = vmatpush.bf16.msra.mxu0 %v725_v0  ;;  %726 = vmatpush.bf16.msra.mxu1 %v725_v0  ;;  %s732_s9 = smul.u32 72, %s1076_s24  ;;  %v722_v13 = vld [vmem:[%s1059_s1 + $0x10] sm:$0xff]  ;;  %v721_v21 = vld [vmem:[%s1059_s1 + $0x8] sm:$0xff]  ;;  %v720_v29 = vld [vmem:[%s1059_s1] sm:$0xff]  ;;  %vm322_vm2 = vcmask 261120   ;;  %vm329_vm3 = vcmask 523264  }
  0x10   : > { %vm386_vm4 = vcmask 785408   ;;  %v777_v42 = vld [vmem:[%s1060_s2] ss:$0 sm:$0xff]  ;;  %s689_s14 = sshll.u32 %s1076_s24, 3  ;;  %vm589_vm12 = vcmask 261122   ;;  %vm571_vm13 = vcmask 1041408  }
  0x11   : > { %s265_s13 = scalar_lea.vmem %s1058_s0, %s732_s9  ;;  %s848_s9 = smov 96  }
  0x12   : > { %s278_s16 = scalar_lea.vmem %s265_s13, %s691_s10  ;;  %s688_s10 = sshll.u32 %s828_s23, 2 }
  0x13   : > { %394 = vmatpush.bf16.msra.mxu0 %v724_v1  ;;  %727 = vmatpush.bf16.msra.mxu1 %v724_v1  ;;  %v936_v3 = vld [vmem:[%s278_s16] sm:$0xff]  ;;  %v938_v4 = vld [vmem:[%s278_s16 + $0x8] sm:$0xff]  ;;  %v940_v5 = vld [vmem:[%s278_s16 + $0x10] sm:$0xff]  ;;  %p269_p6 = scmp.lt.s32.totalorder %s688_s10, 7 }
  0x14   : > { %v942_v6 = vld [vmem:[%s278_s16 + $0x18] sm:$0xff]  ;;  %v284_v7 = vpack.c.bf16 %v936_v3, %v936_v3  ;;  %v285_v8 = vpack.c.bf16 %v938_v4, %v938_v4  ;;  %v286_v9 = vpack.c.bf16 %v940_v5, %v940_v5  ;;  %v950_v10 = vld [vmem:[%s278_s16 + $0x20] sm:$0xff] }
  0x15   : > { %v287_v11 = vpack.c.bf16 %v942_v6, %v942_v6  ;;  %v288_v12 = vpack.c.bf16 %v950_v10, %v950_v10  ;;  %s1078_s10 = smov (!%p269_p6, %s688_s10), 7 }
  0x16   : > { %v293_v14 = vunpack.c.l.b16 %v284_v7  ;;  %v294_v15 = vunpack.c.l.b16 %v285_v8  ;;  %v295_v16 = vunpack.c.l.b16 %v286_v9  ;;  %s272_s16 = sadd.s32 %s689_s14, %s1078_s10 }
  0x17   : > { %395 = vmatpush.bf16.msra.mxu0 %v723_v2  ;;  %728 = vmatpush.bf16.msra.mxu1 %v723_v2  ;;  %v296_v17 = vunpack.c.l.b16 %v287_v11  ;;  %v300_v18 = vunpack.c.l.b16 %v288_v12  ;;  %s690_s17 = sshll.u32 %s272_s16, 3 }
  0x18   : > { %v297_v19 = vpack.c.b16 %v294_v15, %v293_v14  ;;  %s1015_s19 = scalar_lea.vmem %s1064_s6, %s690_s17 }
  0x19   : > { %v298_v20 = vpack.c.b16 %v296_v17, %v295_v16  ;;  %v301_v26 = vpack.c.b16 %v300_v18, %v300_v18 }
  0x1a   : > { %v303_v22 = vrot.slane %v297_v19, 1  ;;  %v313_v23 = vrot.slane %v297_v19, 2 }
  0x1b   : > { %396 = vmatpush.bf16.msra.mxu0 %v722_v13  ;;  %729 = vmatpush.bf16.msra.mxu1 %v722_v13  ;;  %v304_v24 = vrot.slane %v298_v20, 1  ;;  %v314_v25 = vrot.slane %v298_v20, 2  ;;  %v306_v30 = vrot.slane %v301_v26, 1  ;;  %v316_v31 = vrot.slane %v301_v26, 2 }
  0x1d   : > { %v305_v27 = vsel %vm302_vm0, %v303_v22, %v304_v24  ;;  %v315_v28 = vsel %vm312_vm1, %v313_v23, %v314_v25  ;;  %v307_v32 = vsel %vm302_vm0, %v304_v24, %v306_v30  ;;  %v317_v33 = vsel %vm312_vm1, %v314_v25, %v316_v31 }
  0x1e   : > { %308 = vrot.lane.b32.xlu0 %v305_v27, %s846_s29  ;;  %318 = vrot.lane.b32.xlu1 %v315_v28, %s847_s30  ;;  %v849_v24 = vmov 32.0  }
  0x1f   : > { %397 = vmatpush.bf16.msra.mxu0 %v721_v21  ;;  %730 = vmatpush.bf16.msra.mxu1 %v721_v21 }
  0x23   : > { %398 = vmatpush.bf16.msra.mxu0 %v720_v29  ;;  %731 = vmatpush.bf16.msra.mxu1 %v720_v29 }
  0x26   : > { %310 = vrot.lane.b32.xlu0 %v307_v32, %s846_s29  ;;  %320 = vrot.lane.b32.xlu1 %v317_v33, %s847_s30 }
  0x90   : > { %v309_v34 = vpop.permute.xlu0 %308  ;;  %v319_v35 = vpop.permute.xlu1 %318 }
  0x91   : > { %v325_v36 = vsel %vm322_vm2, %v297_v19, %v309_v34 }
  0x92   : > { %v331_v37 = vsel %vm329_vm3, %v325_v36, %v319_v35 }
  0x93   : > { %716 = vmatmul.msk.bf16.vlgmr.msra.gmra.mxu0 %vm386_vm4, %v331_v37 }
  0x98   : > { %v311_v38 = vpop.permute.xlu0 %310  ;;  %v321_v39 = vpop.permute.xlu1 %320 }
  0x99   : > { %v328_v40 = vsel %vm322_vm2, %v298_v20, %v311_v38 }
  0x9a   : > { %v333_v41 = vsel %vm329_vm3, %v328_v40, %v321_v39 }
  0x9b   : > { %717 = vmatmul.msk.bf16.vlgmr.msra.gmra.mxu1 %vm386_vm4, %v333_v41 }
 0x110   : > { %v400_v43 = vpop.f32.mrf.mxu0 }
 0x111   : > { %v401_v44 = vadd.f32 %v777_v42, %v400_v43 }
 0x113   : > { %v410_v45 = vsub.f32 0.0, %v401_v44 }
 0x115   : > { %v414_v46 = vmul.f32 1.442695, %v410_v45 }
 0x117   : > { %780 = vpow2.f32 %v414_v46 }
 0x118   : > { %v402_v47 = vpop.f32.mrf.mxu0  ;;  %v405_v48 = vpop.f32.mrf.mxu1 }
 0x119   : > { %v403_v49 = vadd.f32 %v777_v42, %v402_v47  ;;  %v406_v50 = vadd.f32 %v777_v42, %v405_v48 }
 0x11b   : > { %v411_v51 = vsub.f32 0.0, %v403_v49  ;;  %v412_v52 = vsub.f32 0.0, %v406_v50 }
 0x11d   : > { %v781_v53 = vpop.eup %780  ;;  %v416_v54 = vmul.f32 1.442695, %v411_v51  ;;  %v418_v55 = vmul.f32 1.442695, %v412_v52 }
 0x11e   : > { %v422_v56 = vadd.f32 1.0, %v781_v53 }
 0x11f   : > { %782 = vpow2.f32 %v416_v54 }
 0x120   : > { %784 = vrcp.f32 %v422_v56  ;;  %v407_v57 = vpop.f32.mrf.mxu1 }
 0x121   : > { %786 = vpow2.f32 %v418_v55  ;;  %v408_v58 = vadd.f32 %v777_v42, %v407_v57 }
 0x123   : > { %v413_v59 = vsub.f32 0.0, %v408_v58 }
 0x125   : > { %v783_v60 = vpop.eup %782  ;;  %v420_v61 = vmul.f32 1.442695, %v413_v59 }
 0x126   : > { %v785_v62 = vpop.eup %784  ;;  %v423_v63 = vadd.f32 1.0, %v783_v60 }
 0x127   : > { %v787_v0 = vpop.eup %786  ;;  %788 = vpow2.f32 %v420_v61  ;;  %434 = vrot.lane.b32.xlu2 %v785_v62, %s848_s9 }
 0x128   : > { %790 = vrcp.f32 %v423_v63  ;;  %v424_v1 = vadd.f32 1.0, %v787_v0 }
 0x12a   : > { %792 = vrcp.f32 %v424_v1  ;;  %v1002_v1 = vld [vmem:[%s1061_s3] ss:$0 sm:$0xff] }
 0x12d   : > { %v789_v2 = vpop.eup %788 }
 0x12e   : > { %v791_v7 = vpop.eup %790  ;;  %v425_v8 = vadd.f32 1.0, %v789_v2 }
 0x12f   : > { %436 = vrot.lane.b32.xlu2 %v791_v7, %s848_s9 }
 0x130   : > { %v793_v9 = vpop.eup %792  ;;  %794 = vrcp.f32 %v425_v8  ;;  %v1008_v8 = vld [vmem:[%s1062_s4] ss:$0 sm:$0xff] }
 0x131   : > { %438 = vrot.lane.b32.xlu0 %v793_v9, %s848_s9  ;;  %796 = vrcp.f32 %v849_v24 }
 0x136   : > { %v795_v11 = vpop.eup %794 }
 0x137   : > { %440 = vrot.lane.b32.xlu1 %v795_v11, %s848_s9  ;;  %v797_v25 = vpop.eup %796 }
 0x138   : > { %v463_v26 = vmul.f32 32.0, %v797_v25  ;;  %vm467_vm5 = vweird.f32 %v797_v25 }
 0x13a   : > { %v464_v27 = vsub.f32 1.0, %v463_v26 }
 0x13c   : > { %v465_v28 = vmul.f32 %v797_v25, %v464_v27 }
 0x13e   : > { %v466_v29 = vadd.f32 %v797_v25, %v465_v28 }
 0x140   : > { %v978_v30 = vsel %vm467_vm5, %v797_v25, %v466_v29  ;;  %vm594_vm5 = vcmask 254976  }
 0x181   : > { %v435_v12 = vpop.permute.xlu2 %434 }
 0x182   : > { %v446_v13 = vmul.f32 %v435_v12, %v401_v44 }
 0x184   : > { %v450_v14 = vsel %vm322_vm2, %v446_v13, 0.0 }
 0x185   : > { %451 = vadd.xlane.f32.xlu2 %v450_v14 }
 0x189   : > { %v437_v15 = vpop.permute.xlu2 %436 }
 0x18a   : > { %v447_v16 = vmul.f32 %v437_v15, %v403_v49 }
 0x18c   : > { %v453_v17 = vsel %vm322_vm2, %v447_v16, 0.0 }
 0x18d   : > { %454 = vadd.xlane.f32.xlu0 %v453_v17 }
 0x1a3   : > { %v439_v18 = vpop.permute.xlu0 %438 }
 0x1a4   : > { %v448_v19 = vmul.f32 %v439_v18, %v406_v50 }
 0x1a6   : > { %v456_v20 = vsel %vm322_vm2, %v448_v19, 0.0 }
 0x1a7   : > { %457 = vadd.xlane.f32.xlu1 %v456_v20 }
 0x1a9   : > { %v441_v21 = vpop.permute.xlu1 %440 }
 0x1aa   : > { %v449_v22 = vmul.f32 %v441_v21, %v408_v58 }
 0x1ac   : > { %v459_v23 = vsel %vm322_vm2, %v449_v22, 0.0 }
 0x1ad   : > { %460 = vadd.xlane.f32.xlu2 %v459_v23 }
 0x1f8   : > { %v452_v31 = vpop.xlane.xlu2 %451 }
 0x1f9   : > { %v469_v32 = vmul.f32 %v978_v30, %v452_v31 }
 0x1fb   : > { %v473_v33 = vsub.f32 %v446_v13, %v469_v32  ;;  %v562_v13 = vstv %s561_s11 }
 0x1fd   : > { %v477_v34 = vmul.f32 %v473_v33, %v473_v33 }
 0x1ff   : > { %v481_v35 = vsel %vm322_vm2, %v477_v34, 0.0 }
 0x200   : > { %482 = vadd.xlane.f32.xlu2 %v481_v35  ;;  %v455_v36 = vpop.xlane.xlu0 %454 }
 0x201   : > { %v470_v37 = vmul.f32 %v978_v30, %v455_v36 }
 0x203   : > { %v474_v38 = vsub.f32 %v447_v16, %v470_v37 }
 0x205   : > { %v478_v39 = vmul.f32 %v474_v38, %v474_v38 }
 0x207   : > { %v484_v40 = vsel %vm322_vm2, %v478_v39, 0.0 }
 0x208   : > { %485 = vadd.xlane.f32.xlu0 %v484_v40 }
 0x21a   : > { %v458_v41 = vpop.xlane.xlu1 %457 }
 0x21b   : > { %v471_v42 = vmul.f32 %v978_v30, %v458_v41 }
 0x21d   : > { %v985_v43 = vsub.f32 %v448_v19, %v471_v42 }
 0x21f   : > { %v479_v44 = vmul.f32 %v985_v43, %v985_v43 }
 0x220   : > { %v461_v45 = vpop.xlane.xlu2 %460 }
 0x221   : > { %v472_v46 = vmul.f32 %v978_v30, %v461_v45  ;;  %v487_v47 = vsel %vm322_vm2, %v479_v44, 0.0 }
 0x222   : > { %488 = vadd.xlane.f32.xlu1 %v487_v47 }
 0x223   : > { %v991_v48 = vsub.f32 %v449_v22, %v472_v46 }
 0x225   : > { %v480_v49 = vmul.f32 %v991_v48, %v991_v48 }
 0x227   : > { %v490_v50 = vsel %vm322_vm2, %v480_v49, 0.0 }
 0x228   : > { %491 = vadd.xlane.f32.xlu2 %v490_v50 }
 0x273   : > { %v483_v51 = vpop.xlane.xlu2 %482 }
 0x274   : > { %v493_v52 = vmul.f32 %v483_v51, %v978_v30 }
 0x276   : > { %v497_v53 = vadd.f32 1e-05, %v493_v52 }
 0x278   : > { %798 = vrsqrt.f32 %v497_v53  ;;  %vm507_vm7 = vweird.f32 %v497_v53 }
 0x27b   : > { %v486_v54 = vpop.xlane.xlu0 %485 }
 0x27c   : > { %v494_v55 = vmul.f32 %v486_v54, %v978_v30 }
 0x27e   : > { %v799_v56 = vpop.eup %798  ;;  %v498_v57 = vadd.f32 1e-05, %v494_v55 }
 0x27f   : > { %v502_v58 = vmul.f32 %v799_v56, %v497_v53  ;;  %vm508_vm6 = vweird.f32 %v799_v56 }
 0x280   : > { %800 = vrsqrt.f32 %v498_v57  ;;  %vm509_vm8 = vmor %vm507_vm7, %vm508_vm6  ;;  %vm517_vm10 = vweird.f32 %v498_v57 }
 0x281   : > { %v503_v59 = vmul.f32 %v799_v56, %v502_v58 }
 0x283   : > { %v504_v60 = vmul.f32 0.5, %v503_v59 }
 0x285   : > { %v505_v61 = vsub.f32 1.5, %v504_v60 }
 0x286   : > { %v801_v62 = vpop.eup %800 }
 0x287   : > { %v506_v63 = vmul.f32 %v799_v56, %v505_v61  ;;  %v512_v0 = vmul.f32 %v801_v62, %v498_v57  ;;  %vm518_vm9 = vweird.f32 %v801_v62 }
 0x288   : > { %vm519_vm11 = vmor %vm517_vm10, %vm518_vm9 }
 0x289   : > { %v510_v2 = vsel %vm509_vm8, %v799_v56, %v506_v63  ;;  %v513_v7 = vmul.f32 %v801_v62, %v512_v0 }
 0x28a   : > { %v541_v9 = vmul.f32 %v510_v2, %v473_v33 }
 0x28b   : > { %v514_v11 = vmul.f32 0.5, %v513_v7 }
 0x28c   : > { %v549_v12 = vmul.f32 %v1002_v1, %v541_v9 }
 0x28d   : > { %v515_v14 = vsub.f32 1.5, %v514_v11 }
 0x28e   : > { %v557_v15 = vadd.f32 %v1008_v8, %v549_v12 }
 0x28f   : > { %v516_v16 = vmul.f32 %v801_v62, %v515_v14 }
 0x290   : > { %v563_v17 = vmul.f32 %v562_v13, %v557_v15 }
 0x291   : > { %v520_v18 = vsel %vm519_vm11, %v801_v62, %v516_v16 }
 0x292   : > { %v572_v19 = vrot.slane %v563_v17, 6  ;;  %v542_v20 = vmul.f32 %v520_v18, %v474_v38 }
 0x294   : > { %v584_v21 = vadd.f32 %v572_v19, %v936_v3  ;;  %v550_v22 = vmul.f32 %v1002_v1, %v542_v20 }
 0x295   : > { %v489_v23 = vpop.xlane.xlu1 %488 }
 0x296   : > { %590 = vst.msk [vmem:[%s1015_s19 - $0x2] sm:$0xfc] %vm589_vm12, %v584_v21  ;;  %v558_v24 = vadd.f32 %v1008_v8, %v550_v22  ;;  %v495_v25 = vmul.f32 %v489_v23, %v978_v30 }
 0x298   : > { %v564_v26 = vmul.f32 %v562_v13, %v558_v24  ;;  %v499_v27 = vadd.f32 1e-05, %v495_v25 }
 0x29a   : > { %v573_v28 = vrot.slane %v564_v26, 6  ;;  %802 = vrsqrt.f32 %v499_v27  ;;  %vm527_vm15 = vweird.f32 %v499_v27 }
 0x29b   : > { %v492_v29 = vpop.xlane.xlu2 %491 }
 0x29c   : > { %v574_v31 = vsel %vm571_vm13, %v572_v19, %v573_v28  ;;  %v496_v32 = vmul.f32 %v492_v29, %v978_v30 }
 0x29d   : > { %v585_v3 = vadd.f32 %v574_v31, %v938_v4 }
 0x29e   : > { %v500_v33 = vadd.f32 1e-05, %v496_v32 }
 0x29f   : > { %591 = vst.msk [vmem:[%s1015_s19 + $0x6] sm:$0xff] %vm322_vm2, %v585_v3 }
 0x2a0   : > { %v803_v34 = vpop.eup %802  ;;  %804 = vrsqrt.f32 %v500_v33  ;;  %vm537_vm3 = vweird.f32 %v500_v33 }
 0x2a1   : > { %v522_v35 = vmul.f32 %v803_v34, %v499_v27  ;;  %vm528_vm14 = vweird.f32 %v803_v34 }
 0x2a2   : > { %vm529_vm0 = vmor %vm527_vm15, %vm528_vm14 }
 0x2a3   : > { %v523_v36 = vmul.f32 %v803_v34, %v522_v35 }
 0x2a5   : > { %v524_v37 = vmul.f32 0.5, %v523_v36 }
 0x2a6   : > { %v805_v38 = vpop.eup %804 }
 0x2a7   : > { %v525_v39 = vsub.f32 1.5, %v524_v37  ;;  %v532_v40 = vmul.f32 %v805_v38, %v500_v33  ;;  %vm538_vm1 = vweird.f32 %v805_v38 }
 0x2a8   : > { %vm539_vm4 = vmor %vm537_vm3, %vm538_vm1 }
 0x2a9   : > { %v526_v41 = vmul.f32 %v803_v34, %v525_v39  ;;  %v533_v42 = vmul.f32 %v805_v38, %v532_v40 }
 0x2ab   : > { %v530_v44 = vsel %vm529_vm0, %v803_v34, %v526_v41  ;;  %v534_v30 = vmul.f32 0.5, %v533_v42 }
 0x2ac   : > { %v543_v4 = vmul.f32 %v530_v44, %v985_v43 }
 0x2ad   : > { %v535_v45 = vsub.f32 1.5, %v534_v30 }
 0x2ae   : > { %v551_v46 = vmul.f32 %v1002_v1, %v543_v4 }
 0x2af   : > { %v536_v47 = vmul.f32 %v805_v38, %v535_v45 }
 0x2b0   : > { %v559_v49 = vadd.f32 %v1008_v8, %v551_v46 }
 0x2b1   : > { %v540_v50 = vsel %vm539_vm4, %v805_v38, %v536_v47 }
 0x2b2   : > { %v565_v51 = vmul.f32 %v562_v13, %v559_v49  ;;  %v544_v52 = vmul.f32 %v540_v50, %v991_v48 }
 0x2b4   : > { %v575_v53 = vrot.slane %v565_v51, 6  ;;  %v552_v54 = vmul.f32 %v1002_v1, %v544_v52 }
 0x2b6   : > { %v576_v43 = vsel %vm571_vm13, %v573_v28, %v575_v53  ;;  %v560_v55 = vadd.f32 %v1008_v8, %v552_v54 }
 0x2b7   : > { %v586_v56 = vadd.f32 %v576_v43, %v940_v5 }
 0x2b8   : > { %v566_v57 = vmul.f32 %v562_v13, %v560_v55 }
 0x2b9   : > { %592 = vst.msk [vmem:[%s1015_s19 + $0xe] sm:$0xff] %vm322_vm2, %v586_v56 }
 0x2ba   : > { %v577_v58 = vrot.slane %v566_v57, 6 }
 0x2bc   : > { %v578_v59 = vsel %vm571_vm13, %v575_v53, %v577_v58  ;;  %v588_v60 = vadd.f32 %v577_v58, %v950_v10 }
 0x2bd   : > { %v587_v48 = vadd.f32 %v578_v59, %v942_v6 }
 0x2be   : > { %595 = vst.msk [vmem:[%s1015_s19 + $0x1e] sm:$0x3] %vm594_vm5, %v588_v60 }
 0x2bf   : > { %593 = vst.msk [vmem:[%s1015_s19 + $0x16] sm:$0xff] %vm322_vm2, %v587_v48 }
 0x2c0 PF: > { %s17_s27 = sadd.s32 1, %s844_s27   ;;  %s1065_s23 = smov %s836_s25 }
 0x2c1   : > { %p14_p7 = scmp.ge.s32.totalorder %s17_s27, 6   ;;  %s1066_s24 = smov %s840_s26 }
 0x2c2   : > { %s1067_s25 = smov %s1070_s5  ;;  %s1068_s26 = smov %s1074_s28 }
 0x2c3   :  { %16 = sbr.rel (!%p14_p7) target bundleno = 3 (0x3), region = 75 }

// kernel: tpu_custom_call.1
= control target key start
LH: loop header
LB: loop body
LE: loop exit
PB: predicated region body
PF: predicated region fallthrough
CT: control target
= control target key end

     0   :  { %s888_s23 = smov 0   ;;  %s890_s24 = smov 0   ;;  %s1058_s0 = inlined_call_operand.vmem [shape: f32[2,72,32], index: 0, kind: input, shape index: {}]   ;;  %s1059_s1 = inlined_call_operand.vmem [shape: bf16[96,64], index: 1, kind: input, shape index: {}]   ;;  %s1060_s2 = inlined_call_operand.vmem [shape: f32[1,64], index: 2, kind: input, shape index: {}]   ;;  %s1061_s3 = inlined_call_operand.vmem [shape: f32[1,32], index: 3, kind: input, shape index: {}]   ;;  %s1062_s4 = inlined_call_operand.vmem [shape: f32[1,32], index: 4, kind: input, shape index: {}]   ;;  %s1063_s5 = inlined_call_operand.<no memory space> [shape: f32[1], index: 5, kind: input, shape index: {}]   ;;  %s1064_s6 = inlined_call_operand.vmem [shape: f32[2,64,32], index: 6, kind: output, shape index: {}]  }
   0x1   :  { %11 = sst [smem:[#allocation2]] %s1063_s5  ;;  %s892_s25 = smov 0  }
   0x2   :  { %s894_s26 = smov 0   ;;  %s896_s27 = smov 0  }
   0x3 LB: > { %s26_s5 = sadd.s32 1, %s836_s25  ;;  %s29_s28 = sadd.s32 1, %s840_s26  ;;  %s844_s27 = sphi %s896_s27, %s17_s27   ;;  %s840_s26 = sphi %s894_s26, %s1068_s26   ;;  %s836_s25 = sphi %s892_s25, %s1067_s25   ;;  %s832_s24 = sphi %s890_s24, %s1066_s24   ;;  %s828_s23 = sphi %s888_s23, %s1065_s23  }
   0x4   : > { %p27_p0 = scmp.ge.s32.totalorder %s26_s5, 2  ;;  %p686_p1 = scmp.ge.s32.totalorder %s844_s27, 1 }
   0x5   : > { %p227_p2 = scmp.lt.s32.totalorder %s844_s27, 5 }
   0x6   : > { %s1070_s5 = smov (%p27_p0, %s26_s5), 0  ;;  %s1072_s28 = smov (!%p27_p0, %s29_s28), %s840_s26 }
   0x7   : > { %p228_p3 = pnand %p686_p1, %p227_p2  ;;  %p31_p4 = scmp.ge.s32.totalorder %s1072_s28, 2 }
   0x8   : > { %p261_p5 = scmp.lt.s32.totalorder (!%p228_p3), %s832_s24, 1  ;;  %s691_s10 = sshll.u32 (!%p228_p3), %s828_s23, 5 }
   0x9   : > { %s1074_s28 = smov (%p31_p4, %s1072_s28), 0  ;;  %231 = sbr.rel (%p228_p3) target bundleno = 704 (0x2c0), region = 44 }
   0xa   : > { %s846_s29 = smov (!%p228_p3), 32   ;;  %s847_s30 = smov (!%p228_p3), 64  }
   0xb   : > { %s561_s11 = sld [smem:[#allocation2]] (!%p228_p3) }
   0xe   : > { %v725_v0 = vld [vmem:[%s1059_s1 + $0x28] sm:$0xff]  ;;  %s1076_s24 = smov (!%p261_p5, %s832_s24), 1  ;;  %v724_v1 = vld [vmem:[%s1059_s1 + $0x20] sm:$0xff]  ;;  %v723_v2 = vld [vmem:[%s1059_s1 + $0x18] sm:$0xff]  ;;  %vm302_vm0 = vcmask 1046528   ;;  %vm312_vm1 = vcmask 1045504  }
   0xf   : > { %393 = vmatpush.bf16.msra.mxu0 %v725_v0  ;;  %726 = vmatpush.bf16.msra.mxu1 %v725_v0  ;;  %s732_s9 = smul.u32 72, %s1076_s24  ;;  %v722_v13 = vld [vmem:[%s1059_s1 + $0x10] sm:$0xff]  ;;  %v721_v21 = vld [vmem:[%s1059_s1 + $0x8] sm:$0xff]  ;;  %v720_v29 = vld [vmem:[%s1059_s1] sm:$0xff]  ;;  %vm322_vm2 = vcmask 261120   ;;  %vm329_vm3 = vcmask 523264  }
  0x10   : > { %vm386_vm4 = vcmask 785408   ;;  %v777_v42 = vld [vmem:[%s1060_s2] ss:$0 sm:$0xff]  ;;  %s689_s14 = sshll.u32 %s1076_s24, 3  ;;  %vm589_vm12 = vcmask 261122   ;;  %vm571_vm13 = vcmask 1041408  }
  0x11   : > { %s265_s13 = scalar_lea.vmem %s1058_s0, %s732_s9  ;;  %s848_s9 = smov 96  }
  0x12   : > { %s278_s16 = scalar_lea.vmem %s265_s13, %s691_s10  ;;  %s688_s10 = sshll.u32 %s828_s23, 2 }
  0x13   : > { %394 = vmatpush.bf16.msra.mxu0 %v724_v1  ;;  %727 = vmatpush.bf16.msra.mxu1 %v724_v1  ;;  %v936_v3 = vld [vmem:[%s278_s16] sm:$0xff]  ;;  %v938_v4 = vld [vmem:[%s278_s16 + $0x8] sm:$0xff]  ;;  %v940_v5 = vld [vmem:[%s278_s16 + $0x10] sm:$0xff]  ;;  %p269_p6 = scmp.lt.s32.totalorder %s688_s10, 7 }
  0x14   : > { %v942_v6 = vld [vmem:[%s278_s16 + $0x18] sm:$0xff]  ;;  %v284_v7 = vpack.c.bf16 %v936_v3, %v936_v3  ;;  %v285_v8 = vpack.c.bf16 %v938_v4, %v938_v4  ;;  %v286_v9 = vpack.c.bf16 %v940_v5, %v940_v5  ;;  %v950_v10 = vld [vmem:[%s278_s16 + $0x20] sm:$0xff] }
  0x15   : > { %v287_v11 = vpack.c.bf16 %v942_v6, %v942_v6  ;;  %v288_v12 = vpack.c.bf16 %v950_v10, %v950_v10  ;;  %s1078_s10 = smov (!%p269_p6, %s688_s10), 7 }
  0x16   : > { %v293_v14 = vunpack.c.l.b16 %v284_v7  ;;  %v294_v15 = vunpack.c.l.b16 %v285_v8  ;;  %v295_v16 = vunpack.c.l.b16 %v286_v9  ;;  %s272_s16 = sadd.s32 %s689_s14, %s1078_s10 }
  0x17   : > { %395 = vmatpush.bf16.msra.mxu0 %v723_v2  ;;  %728 = vmatpush.bf16.msra.mxu1 %v723_v2  ;;  %v296_v17 = vunpack.c.l.b16 %v287_v11  ;;  %v300_v18 = vunpack.c.l.b16 %v288_v12  ;;  %s690_s17 = sshll.u32 %s272_s16, 3 }
  0x18   : > { %v297_v19 = vpack.c.b16 %v294_v15, %v293_v14  ;;  %s1015_s19 = scalar_lea.vmem %s1064_s6, %s690_s17 }
  0x19   : > { %v298_v20 = vpack.c.b16 %v296_v17, %v295_v16  ;;  %v301_v26 = vpack.c.b16 %v300_v18, %v300_v18 }
  0x1a   : > { %v303_v22 = vrot.slane %v297_v19, 1  ;;  %v313_v23 = vrot.slane %v297_v19, 2 }
  0x1b   : > { %396 = vmatpush.bf16.msra.mxu0 %v722_v13  ;;  %729 = vmatpush.bf16.msra.mxu1 %v722_v13  ;;  %v304_v24 = vrot.slane %v298_v20, 1  ;;  %v314_v25 = vrot.slane %v298_v20, 2  ;;  %v306_v30 = vrot.slane %v301_v26, 1  ;;  %v316_v31 = vrot.slane %v301_v26, 2 }
  0x1d   : > { %v305_v27 = vsel %vm302_vm0, %v303_v22, %v304_v24  ;;  %v315_v28 = vsel %vm312_vm1, %v313_v23, %v314_v25  ;;  %v307_v32 = vsel %vm302_vm0, %v304_v24, %v306_v30  ;;  %v317_v33 = vsel %vm312_vm1, %v314_v25, %v316_v31 }
  0x1e   : > { %308 = vrot.lane.b32.xlu0 %v305_v27, %s846_s29  ;;  %318 = vrot.lane.b32.xlu1 %v315_v28, %s847_s30  ;;  %v849_v24 = vmov 32.0  }
  0x1f   : > { %397 = vmatpush.bf16.msra.mxu0 %v721_v21  ;;  %730 = vmatpush.bf16.msra.mxu1 %v721_v21 }
  0x23   : > { %398 = vmatpush.bf16.msra.mxu0 %v720_v29  ;;  %731 = vmatpush.bf16.msra.mxu1 %v720_v29 }
  0x26   : > { %310 = vrot.lane.b32.xlu0 %v307_v32, %s846_s29  ;;  %320 = vrot.lane.b32.xlu1 %v317_v33, %s847_s30 }
  0x90   : > { %v309_v34 = vpop.permute.xlu0 %308  ;;  %v319_v35 = vpop.permute.xlu1 %318 }
  0x91   : > { %v325_v36 = vsel %vm322_vm2, %v297_v19, %v309_v34 }
  0x92   : > { %v331_v37 = vsel %vm329_vm3, %v325_v36, %v319_v35 }
  0x93   : > { %716 = vmatmul.msk.bf16.vlgmr.msra.gmra.mxu0 %vm386_vm4, %v331_v37 }
  0x98   : > { %v311_v38 = vpop.permute.xlu0 %310  ;;  %v321_v39 = vpop.permute.xlu1 %320 }
  0x99   : > { %v328_v40 = vsel %vm322_vm2, %v298_v20, %v311_v38 }
  0x9a   : > { %v333_v41 = vsel %vm329_vm3, %v328_v40, %v321_v39 }
  0x9b   : > { %717 = vmatmul.msk.bf16.vlgmr.msra.gmra.mxu1 %vm386_vm4, %v333_v41 }
 0x110   : > { %v400_v43 = vpop.f32.mrf.mxu0 }
 0x111   : > { %v401_v44 = vadd.f32 %v777_v42, %v400_v43 }
 0x113   : > { %v410_v45 = vsub.f32 0.0, %v401_v44 }
 0x115   : > { %v414_v46 = vmul.f32 1.442695, %v410_v45 }
 0x117   : > { %780 = vpow2.f32 %v414_v46 }
 0x118   : > { %v402_v47 = vpop.f32.mrf.mxu0  ;;  %v405_v48 = vpop.f32.mrf.mxu1 }
 0x119   : > { %v403_v49 = vadd.f32 %v777_v42, %v402_v47  ;;  %v406_v50 = vadd.f32 %v777_v42, %v405_v48 }
 0x11b   : > { %v411_v51 = vsub.f32 0.0, %v403_v49  ;;  %v412_v52 = vsub.f32 0.0, %v406_v50 }
 0x11d   : > { %v781_v53 = vpop.eup %780  ;;  %v416_v54 = vmul.f32 1.442695, %v411_v51  ;;  %v418_v55 = vmul.f32 1.442695, %v412_v52 }
 0x11e   : > { %v422_v56 = vadd.f32 1.0, %v781_v53 }
 0x11f   : > { %782 = vpow2.f32 %v416_v54 }
 0x120   : > { %784 = vrcp.f32 %v422_v56  ;;  %v407_v57 = vpop.f32.mrf.mxu1 }
 0x121   : > { %786 = vpow2.f32 %v418_v55  ;;  %v408_v58 = vadd.f32 %v777_v42, %v407_v57 }
 0x123   : > { %v413_v59 = vsub.f32 0.0, %v408_v58 }
 0x125   : > { %v783_v60 = vpop.eup %782  ;;  %v420_v61 = vmul.f32 1.442695, %v413_v59 }
 0x126   : > { %v785_v62 = vpop.eup %784  ;;  %v423_v63 = vadd.f32 1.0, %v783_v60 }
 0x127   : > { %v787_v0 = vpop.eup %786  ;;  %788 = vpow2.f32 %v420_v61  ;;  %434 = vrot.lane.b32.xlu2 %v785_v62, %s848_s9 }
 0x128   : > { %790 = vrcp.f32 %v423_v63  ;;  %v424_v1 = vadd.f32 1.0, %v787_v0 }
 0x12a   : > { %792 = vrcp.f32 %v424_v1  ;;  %v1002_v1 = vld [vmem:[%s1061_s3] ss:$0 sm:$0xff] }
 0x12d   : > { %v789_v2 = vpop.eup %788 }
 0x12e   : > { %v791_v7 = vpop.eup %790  ;;  %v425_v8 = vadd.f32 1.0, %v789_v2 }
 0x12f   : > { %436 = vrot.lane.b32.xlu2 %v791_v7, %s848_s9 }
 0x130   : > { %v793_v9 = vpop.eup %792  ;;  %794 = vrcp.f32 %v425_v8  ;;  %v1008_v8 = vld [vmem:[%s1062_s4] ss:$0 sm:$0xff] }
 0x131   : > { %438 = vrot.lane.b32.xlu0 %v793_v9, %s848_s9  ;;  %796 = vrcp.f32 %v849_v24 }
 0x136   : > { %v795_v11 = vpop.eup %794 }
 0x137   : > { %440 = vrot.lane.b32.xlu1 %v795_v11, %s848_s9  ;;  %v797_v25 = vpop.eup %796 }
 0x138   : > { %v463_v26 = vmul.f32 32.0, %v797_v25  ;;  %vm467_vm5 = vweird.f32 %v797_v25 }
 0x13a   : > { %v464_v27 = vsub.f32 1.0, %v463_v26 }
 0x13c   : > { %v465_v28 = vmul.f32 %v797_v25, %v464_v27 }
 0x13e   : > { %v466_v29 = vadd.f32 %v797_v25, %v465_v28 }
 0x140   : > { %v978_v30 = vsel %vm467_vm5, %v797_v25, %v466_v29  ;;  %vm594_vm5 = vcmask 254976  }
 0x181   : > { %v435_v12 = vpop.permute.xlu2 %434 }
 0x182   : > { %v446_v13 = vmul.f32 %v435_v12, %v401_v44 }
 0x184   : > { %v450_v14 = vsel %vm322_vm2, %v446_v13, 0.0 }
 0x185   : > { %451 = vadd.xlane.f32.xlu2 %v450_v14 }
 0x189   : > { %v437_v15 = vpop.permute.xlu2 %436 }
 0x18a   : > { %v447_v16 = vmul.f32 %v437_v15, %v403_v49 }
 0x18c   : > { %v453_v17 = vsel %vm322_vm2, %v447_v16, 0.0 }
 0x18d   : > { %454 = vadd.xlane.f32.xlu0 %v453_v17 }
 0x1a3   : > { %v439_v18 = vpop.permute.xlu0 %438 }
 0x1a4   : > { %v448_v19 = vmul.f32 %v439_v18, %v406_v50 }
 0x1a6   : > { %v456_v20 = vsel %vm322_vm2, %v448_v19, 0.0 }
 0x1a7   : > { %457 = vadd.xlane.f32.xlu1 %v456_v20 }
 0x1a9   : > { %v441_v21 = vpop.permute.xlu1 %440 }
 0x1aa   : > { %v449_v22 = vmul.f32 %v441_v21, %v408_v58 }
 0x1ac   : > { %v459_v23 = vsel %vm322_vm2, %v449_v22, 0.0 }
 0x1ad   : > { %460 = vadd.xlane.f32.xlu2 %v459_v23 }
 0x1f8   : > { %v452_v31 = vpop.xlane.xlu2 %451 }
 0x1f9   : > { %v469_v32 = vmul.f32 %v978_v30, %v452_v31 }
 0x1fb   : > { %v473_v33 = vsub.f32 %v446_v13, %v469_v32  ;;  %v562_v13 = vstv %s561_s11 }
 0x1fd   : > { %v477_v34 = vmul.f32 %v473_v33, %v473_v33 }
 0x1ff   : > { %v481_v35 = vsel %vm322_vm2, %v477_v34, 0.0 }
 0x200   : > { %482 = vadd.xlane.f32.xlu2 %v481_v35  ;;  %v455_v36 = vpop.xlane.xlu0 %454 }
 0x201   : > { %v470_v37 = vmul.f32 %v978_v30, %v455_v36 }
 0x203   : > { %v474_v38 = vsub.f32 %v447_v16, %v470_v37 }
 0x205   : > { %v478_v39 = vmul.f32 %v474_v38, %v474_v38 }
 0x207   : > { %v484_v40 = vsel %vm322_vm2, %v478_v39, 0.0 }
 0x208   : > { %485 = vadd.xlane.f32.xlu0 %v484_v40 }
 0x21a   : > { %v458_v41 = vpop.xlane.xlu1 %457 }
 0x21b   : > { %v471_v42 = vmul.f32 %v978_v30, %v458_v41 }
 0x21d   : > { %v985_v43 = vsub.f32 %v448_v19, %v471_v42 }
 0x21f   : > { %v479_v44 = vmul.f32 %v985_v43, %v985_v43 }
 0x220   : > { %v461_v45 = vpop.xlane.xlu2 %460 }
 0x221   : > { %v472_v46 = vmul.f32 %v978_v30, %v461_v45  ;;  %v487_v47 = vsel %vm322_vm2, %v479_v44, 0.0 }
 0x222   : > { %488 = vadd.xlane.f32.xlu1 %v487_v47 }
 0x223   : > { %v991_v48 = vsub.f32 %v449_v22, %v472_v46 }
 0x225   : > { %v480_v49 = vmul.f32 %v991_v48, %v991_v48 }
 0x227   : > { %v490_v50 = vsel %vm322_vm2, %v480_v49, 0.0 }
 0x228   : > { %491 = vadd.xlane.f32.xlu2 %v490_v50 }
 0x273   : > { %v483_v51 = vpop.xlane.xlu2 %482 }
 0x274   : > { %v493_v52 = vmul.f32 %v483_v51, %v978_v30 }
 0x276   : > { %v497_v53 = vadd.f32 1e-05, %v493_v52 }
 0x278   : > { %798 = vrsqrt.f32 %v497_v53  ;;  %vm507_vm7 = vweird.f32 %v497_v53 }
 0x27b   : > { %v486_v54 = vpop.xlane.xlu0 %485 }
 0x27c   : > { %v494_v55 = vmul.f32 %v486_v54, %v978_v30 }
 0x27e   : > { %v799_v56 = vpop.eup %798  ;;  %v498_v57 = vadd.f32 1e-05, %v494_v55 }
 0x27f   : > { %v502_v58 = vmul.f32 %v799_v56, %v497_v53  ;;  %vm508_vm6 = vweird.f32 %v799_v56 }
 0x280   : > { %800 = vrsqrt.f32 %v498_v57  ;;  %vm509_vm8 = vmor %vm507_vm7, %vm508_vm6  ;;  %vm517_vm10 = vweird.f32 %v498_v57 }
 0x281   : > { %v503_v59 = vmul.f32 %v799_v56, %v502_v58 }
 0x283   : > { %v504_v60 = vmul.f32 0.5, %v503_v59 }
 0x285   : > { %v505_v61 = vsub.f32 1.5, %v504_v60 }
 0x286   : > { %v801_v62 = vpop.eup %800 }
 0x287   : > { %v506_v63 = vmul.f32 %v799_v56, %v505_v61  ;;  %v512_v0 = vmul.f32 %v801_v62, %v498_v57  ;;  %vm518_vm9 = vweird.f32 %v801_v62 }
 0x288   : > { %vm519_vm11 = vmor %vm517_vm10, %vm518_vm9 }
 0x289   : > { %v510_v2 = vsel %vm509_vm8, %v799_v56, %v506_v63  ;;  %v513_v7 = vmul.f32 %v801_v62, %v512_v0 }
 0x28a   : > { %v541_v9 = vmul.f32 %v510_v2, %v473_v33 }
 0x28b   : > { %v514_v11 = vmul.f32 0.5, %v513_v7 }
 0x28c   : > { %v549_v12 = vmul.f32 %v1002_v1, %v541_v9 }
 0x28d   : > { %v515_v14 = vsub.f32 1.5, %v514_v11 }
 0x28e   : > { %v557_v15 = vadd.f32 %v1008_v8, %v549_v12 }
 0x28f   : > { %v516_v16 = vmul.f32 %v801_v62, %v515_v14 }
 0x290   : > { %v563_v17 = vmul.f32 %v562_v13, %v557_v15 }
 0x291   : > { %v520_v18 = vsel %vm519_vm11, %v801_v62, %v516_v16 }
 0x292   : > { %v572_v19 = vrot.slane %v563_v17, 6  ;;  %v542_v20 = vmul.f32 %v520_v18, %v474_v38 }
 0x294   : > { %v584_v21 = vadd.f32 %v572_v19, %v936_v3  ;;  %v550_v22 = vmul.f32 %v1002_v1, %v542_v20 }
 0x295   : > { %v489_v23 = vpop.xlane.xlu1 %488 }
 0x296   : > { %590 = vst.msk [vmem:[%s1015_s19 - $0x2] sm:$0xfc] %vm589_vm12, %v584_v21  ;;  %v558_v24 = vadd.f32 %v1008_v8, %v550_v22  ;;  %v495_v25 = vmul.f32 %v489_v23, %v978_v30 }
 0x298   : > { %v564_v26 = vmul.f32 %v562_v13, %v558_v24  ;;  %v499_v27 = vadd.f32 1e-05, %v495_v25 }
 0x29a   : > { %v573_v28 = vrot.slane %v564_v26, 6  ;;  %802 = vrsqrt.f32 %v499_v27  ;;  %vm527_vm15 = vweird.f32 %v499_v27 }
 0x29b   : > { %v492_v29 = vpop.xlane.xlu2 %491 }
 0x29c   : > { %v574_v31 = vsel %vm571_vm13, %v572_v19, %v573_v28  ;;  %v496_v32 = vmul.f32 %v492_v29, %v978_v30 }
 0x29d   : > { %v585_v3 = vadd.f32 %v574_v31, %v938_v4 }
 0x29e   : > { %v500_v33 = vadd.f32 1e-05, %v496_v32 }
 0x29f   : > { %591 = vst.msk [vmem:[%s1015_s19 + $0x6] sm:$0xff] %vm322_vm2, %v585_v3 }
 0x2a0   : > { %v803_v34 = vpop.eup %802  ;;  %804 = vrsqrt.f32 %v500_v33  ;;  %vm537_vm3 = vweird.f32 %v500_v33 }
 0x2a1   : > { %v522_v35 = vmul.f32 %v803_v34, %v499_v27  ;;  %vm528_vm14 = vweird.f32 %v803_v34 }
 0x2a2   : > { %vm529_vm0 = vmor %vm527_vm15, %vm528_vm14 }
 0x2a3   : > { %v523_v36 = vmul.f32 %v803_v34, %v522_v35 }
 0x2a5   : > { %v524_v37 = vmul.f32 0.5, %v523_v36 }
 0x2a6   : > { %v805_v38 = vpop.eup %804 }
 0x2a7   : > { %v525_v39 = vsub.f32 1.5, %v524_v37  ;;  %v532_v40 = vmul.f32 %v805_v38, %v500_v33  ;;  %vm538_vm1 = vweird.f32 %v805_v38 }
 0x2a8   : > { %vm539_vm4 = vmor %vm537_vm3, %vm538_vm1 }
 0x2a9   : > { %v526_v41 = vmul.f32 %v803_v34, %v525_v39  ;;  %v533_v42 = vmul.f32 %v805_v38, %v532_v40 }
 0x2ab   : > { %v530_v44 = vsel %vm529_vm0, %v803_v34, %v526_v41  ;;  %v534_v30 = vmul.f32 0.5, %v533_v42 }
 0x2ac   : > { %v543_v4 = vmul.f32 %v530_v44, %v985_v43 }
 0x2ad   : > { %v535_v45 = vsub.f32 1.5, %v534_v30 }
 0x2ae   : > { %v551_v46 = vmul.f32 %v1002_v1, %v543_v4 }
 0x2af   : > { %v536_v47 = vmul.f32 %v805_v38, %v535_v45 }
 0x2b0   : > { %v559_v49 = vadd.f32 %v1008_v8, %v551_v46 }
 0x2b1   : > { %v540_v50 = vsel %vm539_vm4, %v805_v38, %v536_v47 }
 0x2b2   : > { %v565_v51 = vmul.f32 %v562_v13, %v559_v49  ;;  %v544_v52 = vmul.f32 %v540_v50, %v991_v48 }
 0x2b4   : > { %v575_v53 = vrot.slane %v565_v51, 6  ;;  %v552_v54 = vmul.f32 %v1002_v1, %v544_v52 }
 0x2b6   : > { %v576_v43 = vsel %vm571_vm13, %v573_v28, %v575_v53  ;;  %v560_v55 = vadd.f32 %v1008_v8, %v552_v54 }
 0x2b7   : > { %v586_v56 = vadd.f32 %v576_v43, %v940_v5 }
 0x2b8   : > { %v566_v57 = vmul.f32 %v562_v13, %v560_v55 }
 0x2b9   : > { %592 = vst.msk [vmem:[%s1015_s19 + $0xe] sm:$0xff] %vm322_vm2, %v586_v56 }
 0x2ba   : > { %v577_v58 = vrot.slane %v566_v57, 6 }
 0x2bc   : > { %v578_v59 = vsel %vm571_vm13, %v575_v53, %v577_v58  ;;  %v588_v60 = vadd.f32 %v577_v58, %v950_v10 }
 0x2bd   : > { %v587_v48 = vadd.f32 %v578_v59, %v942_v6 }
 0x2be   : > { %595 = vst.msk [vmem:[%s1015_s19 + $0x1e] sm:$0x3] %vm594_vm5, %v588_v60 }
 0x2bf   : > { %593 = vst.msk [vmem:[%s1015_s19 + $0x16] sm:$0xff] %vm322_vm2, %v587_v48 }
 0x2c0 PF: > { %s17_s27 = sadd.s32 1, %s844_s27   ;;  %s1065_s23 = smov %s836_s25 }
 0x2c1   : > { %p14_p7 = scmp.ge.s32.totalorder %s17_s27, 6   ;;  %s1066_s24 = smov %s840_s26 }
 0x2c2   : > { %s1067_s25 = smov %s1070_s5  ;;  %s1068_s26 = smov %s1074_s28 }
 0x2c3   :  { %16 = sbr.rel (!%p14_p7) target bundleno = 3 (0x3), region = 75 }

</bundles_post_ra>
